<compile_context>
chip_gen: v6e
topology: v6e:2x2x1
jax: 0.10.0
libtpu: 0.0.40
codegen_flags: <defaults>
</compile_context>

<pallas_src>
import math

import jax
import jax.numpy as jnp
from jax.experimental import pallas as pl
from jax.experimental.pallas import tpu as pltpu


def _glu_kernel(x_ref, o_ref):
    """x_ref: (TR, 2H) tile in VMEM; o_ref: (TR, H) tile.  o = a * sigmoid(b)."""
    h = o_ref.shape[-1]
    x = x_ref[...]
    a = x[:, :h].astype(jnp.float32)
    b = x[:, h:].astype(jnp.float32)
    # sigmoid(b) = 1 / (1 + exp(-b)); exp goes to the EUP slot, the multiply
    # to the VPU.  (pl.reciprocal(..., approx=True) is available if the EUP
    # ever becomes the binding unit, at a small accuracy cost.)
    sig = pl.reciprocal(1.0 + jnp.exp(-b), approx=False)
    o_ref[...] = (a * sig).astype(o_ref.dtype)


def _round_up(x: int, m: int) -> int:
    return ((x + m - 1) // m) * m


def _round_down(x: int, m: int) -> int:
    return (x // m) * m


def pallas_glu(x: jnp.ndarray, dim: int = -1) -> jnp.ndarray:
    """GLU along `dim`, matching torch.nn.GLU(dim) / F.glu semantics."""
    ndim = x.ndim
    dim = dim % ndim
    n = x.shape[dim]
    if n % 2 != 0:
        raise ValueError(f"GLU: size of dimension {dim} must be even, got {n}")
    half = n // 2

    # Move the split axis to the last (lane) dim.  For dim == -1 this is a
    # no-op (no transpose emitted).  For other dims the transpose costs an
    # extra HBM read+write of the tensor outside the kernel.
    if dim != ndim - 1:
        perm = [a for a in range(ndim) if a != dim] + [dim]
        xt = jnp.transpose(x, perm)
    else:
        perm = None
        xt = x

    lead_shape = xt.shape[:-1]
    R = math.prod(lead_shape) if lead_shape else 1
    x2d = xt.reshape(R, n)

    # ---- Row-tile selection (VMEM-budget driven, sublane-aligned) ----------
    elt = jnp.dtype(x.dtype).itemsize
    tile_budget_bytes = 2 * 1024 * 1024            # per pipelined input buffer
    tr = _round_down(max(tile_budget_bytes // (n * elt), 8), 8)
    tr = max(8, min(tr, 2048, _round_up(R, 8)))    # multiple of 8, capped
    num_tiles = -(-R // tr)
    if num_tiles == 1 and R > 8:
        # Keep >= 2 grid steps so v7x (2 TensorCores) can shard the row axis.
        tr = max(8, _round_up(-(-R // 2), 8))
        num_tiles = -(-R // tr)
    r_padded = num_tiles * tr
    if r_padded != R:
        # Pad remainder rows with zeros (sigmoid(0)*0 == 0; sliced off below).
        x2d = jnp.pad(x2d, ((0, r_padded - R), (0, 0)))

    out2d = pl.pallas_call(
        _glu_kernel,
        out_shape=jax.ShapeDtypeStruct((r_padded, half), x.dtype),
        grid_spec=pltpu.PrefetchScalarGridSpec(
            num_scalar_prefetch=0,
            grid=(num_tiles,),
            in_specs=[pl.BlockSpec((tr, n), lambda i: (i, 0))],
            out_specs=pl.BlockSpec((tr, half), lambda i: (i, 0)),
        ),
        compiler_params=pltpu.CompilerParams(
            dimension_semantics=("parallel",),
            vmem_limit_bytes=32 * 1024 * 1024,     # safe on v5e/v6e/v7x
        ),
    )(x2d)

    out2d = out2d[:R]
    out_t = out2d.reshape(lead_shape + (half,))
    if perm is not None:
        inv_perm = [0] * ndim
        for i, p in enumerate(perm):
            inv_perm[p] = i
        return jnp.transpose(out_t, inv_perm)
    return out_t


if __name__ == "__main__":
    key = jax.random.PRNGKey(0)
    k1, k2 = jax.random.split(key)

    # Primary case: split along the last dim.  2H = 256 -> H = 128 keeps the
    # output lane-dense (unmasked 128-lane stores).
    x = jax.random.normal(k1, (2, 4, 8, 256), dtype=jnp.float32)
    out = jax.block_until_ready(pallas_glu(x, dim=-1))
    a, b = jnp.split(x, 2, axis=-1)
    ref = a * jax.nn.sigmoid(b)
    assert out.shape == (2, 4, 8, 128)
    assert jnp.allclose(out, ref, atol=1e-6, rtol=1e-6)

    # Secondary case: split along a non-last dim (exercises the transpose path).
    x2 = jax.random.normal(k2, (2, 8, 16, 32), dtype=jnp.float32)
    out2 = jax.block_until_ready(pallas_glu(x2, dim=1))
    a2, b2 = jnp.split(x2, 2, axis=1)
    ref2 = a2 * jax.nn.sigmoid(b2)
    assert out2.shape == (2, 4, 16, 32)
    assert jnp.allclose(out2, ref2, atol=1e-6, rtol=1e-6)

    print("KERNEL_OK")
</pallas_src>

<mosaic_0001>
module attributes {stable_mosaic.version = 11 : i64} {
  func.func @_glu_kernel(%arg0: i32, %arg1: memref<32x256xf32, #tpu.memory_space<vmem>>, %arg2: memref<32x128xf32, #tpu.memory_space<vmem>>) attributes {dimension_semantics = [#tpu.dimension_semantics<parallel>], iteration_bounds = array<i64: 2>, scalar_prefetch = 0 : i64, scratch_operands = 0 : i64, tpu.core_type = #tpu.core_type<tc>, window_params = [{transform_indices = @transform_0, window_bounds = array<i64: 32, 256>}, {transform_indices = @transform_1, window_bounds = array<i64: 32, 128>}]} {
    %c0 = arith.constant 0 : index
    %c0_0 = arith.constant 0 : index
    %0 = vector.load %arg1[%c0, %c0_0] : memref<32x256xf32, #tpu.memory_space<vmem>>, vector<32x256xf32>
    %1 = vector.extract_strided_slice %0 {offsets = [0, 0], sizes = [32, 128], strides = [1, 1]} : vector<32x256xf32> to vector<32x128xf32>
    %2 = vector.extract_strided_slice %0 {offsets = [0, 128], sizes = [32, 128], strides = [1, 1]} : vector<32x256xf32> to vector<32x128xf32>
    %cst = arith.constant 0.000000e+00 : f32
    %3 = vector.broadcast %cst : f32 to vector<32x128xf32>
    %4 = arith.subf %3, %2 : vector<32x128xf32>
    %5 = math.exp %4 : vector<32x128xf32>
    %cst_1 = arith.constant 1.000000e+00 : f32
    %6 = vector.broadcast %cst_1 : f32 to vector<32x128xf32>
    %7 = arith.addf %6, %5 : vector<32x128xf32>
    %8 = tpu.reciprocal %7 : vector<32x128xf32> -> vector<32x128xf32>
    %9 = arith.mulf %1, %8 : vector<32x128xf32>
    %c0_2 = arith.constant 0 : index
    %c0_3 = arith.constant 0 : index
    %10 = vector.load %arg2[%c0_2, %c0_3] : memref<32x128xf32, #tpu.memory_space<vmem>>, vector<32x128xf32>
    tpu.vector_store %arg2[%c0_2, %c0_3], %9 {strides = array<i32>} : memref<32x128xf32, #tpu.memory_space<vmem>>, vector<32x128xf32>,
    return
  }
  func.func @transform_0(%arg0: i32) -> (i32, i32) {
    %c0_i32 = arith.constant 0 : i32
    %c0_i32_0 = arith.constant 0 : i32
    return %arg0, %c0_i32 : i32, i32
  }
  func.func @transform_1(%arg0: i32) -> (i32, i32) {
    %c0_i32 = arith.constant 0 : i32
    %c0_i32_0 = arith.constant 0 : i32
    return %arg0, %c0_i32 : i32, i32
  }
}

</mosaic_0001>

<bundles_post_ra>
// kernel: tpu_custom_call.1
= control target key start
LH: loop header
LB: loop body
LE: loop exit
PB: predicated region body
PF: predicated region fallthrough
CT: control target
= control target key end

     0   :  { %6 = vsyncpa [#allocation3], 0  ;;  %s620_s0 = inlined_call_operand.hbm [shape: f32[64,256], index: 0, kind: input, shape index: {}]   ;;  %s621_s1 = inlined_call_operand.hbm [shape: f32[64,128], index: 1, kind: output, shape index: {}]  }
   0x1   :  { %8 = vsyncpa [#allocation3 + $0x1], 0 }
   0x2   :  { %9 = vsyncpa [#allocation4], 0 }
   0x3   :  { %11 = vsyncpa [#allocation4 + $0x1], 0  ;;  %s455_s6 = smov 0   ;;  %s457_s7 = smov 0  }
   0x4   :  { %s459_s8 = smov 0   ;;  %s461_s9 = smov 0  }
   0x5 LB: > { %s476_s10 = sadd.s32 4294967295, %s437_s9   ;;  %s261_s11 = sadd.s32 4294967294, %s437_s9   ;;  %s437_s9 = sphi %s461_s9, %s636_s9   ;;  %s433_s8 = sphi %s459_s8, %s635_s8   ;;  %s429_s7 = sphi %s457_s7, %s634_s7   ;;  %s425_s6 = sphi %s455_s6, %s633_s6  }
   0x6   : > { %s480_s12 = sadd.s32 1, %s437_s9   ;;  %s24_s13 = sadd.s32 1, %s433_s8 }
   0x7   : > { %s21_s14 = ssub.s32 %s437_s9, %s480_s12  ;;  %p31_p0 = scmp.ne.s32.totalorder %s433_s8, %s429_s7 }
   0x8   : > { %p22_p1 = scmp.eq.s32.totalorder %s21_s14, 0  ;;  %p32_p2 = scmp.eq.s32.totalorder %s437_s9, 0 }
   0x9   : > { %p37_p3 = scmp.ne.s32.totalorder %s429_s7, %s425_s6  ;;  %p38_p4 = scmp.eq.s32.totalorder %s476_s10, 0 }
   0xa   : > { %s492_s15 = scalar_select %p22_p1, %s433_s8, %s24_s13  }
   0xb   : > { %p494_p5 = por %p32_p2, %p31_p0  ;;  %p498_p6 = por %p38_p4, %p37_p3 }
   0xc   : > { %p61_p7 = scmp.eq.s32.totalorder %s476_s10, 1  ;;  %p67_p8 = scmp.eq.s32.totalorder %s261_s11, 1 }
   0xd   : > { %s625_s17 = scalar_select %p498_p6, 1, 0 }
   0xe   : > { %p291_p10 = scmp.lt.s32.totalorder %s437_s9, 2  ;;  %p505_p11 = por %p61_p7, %p31_p0 }
   0xf   : > { %p509_p12 = por %p67_p8, %p37_p3  ;;  %s87_s20 = sand.u32 1, %s433_s8  }
  0x10   : > { %s626_s18 = scalar_select %p505_p11, 1, 0 }
  0x11   : > { %s627_s19 = scalar_select %p509_p12, 1, 0 }
  0x12   : > { %s277_s21 = sshll.u32 %s437_s9, 10  ;;  %s264_s22 = sshll.u32 %s87_s20, 6 }
  0x13   : > { %s518_s25 = scalar_lea.hbm %s620_s0, %s277_s21  ;;  %s91_s26 = scalar_lea.vmem [#allocation2], %s264_s22 }
  0x14   : > { %s99_s27 = sshll.u32 %s91_s26, 4  ;;  %p522_p13 = pnand %p291_p10, %p494_p5  ;;  %s526_s27 = int_to_ptr.vmem [resolvable:$true] %s99_s27 }
  0x15   : > { %s528_s29 = scalar_lea.sflag [#allocation3], %s87_s20  ;;  %s345_s30 = scalar_lea.hbm %s518_s25, 1024 }
  0x16   : > { %p346_p0 = scmp.ne.s32.totalorder %s518_s25, %s345_s30  ;;  %p347_p1 = pneg %p522_p13 }
  0x17   : > { %s350_s4 = scalar_lea.hbm %s620_s0, 2048  ;;  %p351_p4 = scmp.lt.s32.totalorder %s518_s25, %s620_s0 }
  0x18   : > { %p348_p2 = pnand %p347_p1, %p346_p0  ;;  %p352_p5 = scmp.lt.s32.totalorder %s350_s4, %s345_s30 }
  0x1a   : > { %p349_p3 = pneg %p348_p2  ;;  %p353_p7 = por %p352_p5, %p351_p4 }
  0x1c   : > { %p354_p8 = pnand %p353_p7, %p349_p3 }
  0x1e   : > { %357 = shalt.err (!%p354_p8)
}
  0x1f   : > { %s358_s13 = scalar_lea.vmem %s526_s27, 1024  ;;  %s439_s14 = smov [#allocation2]  }
  0x20   : > { %p359_p10 = scmp.ne.s32.totalorder %s526_s27, %s358_s13  ;;  %s363_s16 = sshll.u32 %s439_s14, 4  ;;  %s364_s16 = int_to_ptr.vmem [resolvable:$false] %s363_s16 }
  0x21   : > { %s365_s20 = scalar_lea.vmem %s364_s16, 2048  ;;  %p366_p2 = scmp.lt.s32.totalorder %s526_s27, %s364_s16 }
  0x22   : > { %p361_p9 = pnand %p359_p10, %p347_p1  ;;  %p367_p12 = scmp.lt.s32.totalorder %s365_s20, %s358_s13 }
  0x24   : > { %p362_p0 = pneg %p361_p9  ;;  %p368_p11 = por %p367_p12, %p366_p2 }
  0x26   : > { %p369_p6 = pnand %p368_p11, %p362_p0 }
  0x28   : > { %372 = shalt.err (!%p369_p6)
}
  0x29   : > { %s440_s21 = smov 256   ;;  %s441_s22 = smov 16  }
  0x2a   : > { %286 = dma.hbm_to_vmem [thread:$0]  (!%p522_p13), %s518_s25, 1024, %s526_s27, %s528_s29, %s440_s21, %s440_s21, %s441_s22  }
  0x2b   : > { %p268_p9 = scmp.ge.s32.totalorder %s437_s9, 1  ;;  %p107_p1 = scmp.lt.s32.totalorder %s437_s9, 3 }
  0x2d   : > { %p108_p3 = pnand %p268_p9, %p107_p1 }
  0x2e   : > { %s552_s23 = sand.u32 (!%p108_p3), 1, %s429_s7   ;;  %p629_p6 = scmp.ne.s32.totalorder (!%p108_p3), %s625_s17, 0 }
  0x2f   : > { %111 = sbr.rel (%p108_p3) target bundleno = 107 (0x6b), region = 24  ;;  %s269_s24 = sshll.u32 (!%p108_p3), %s552_s23, 6 }
  0x30   : > { %s114_s26 = scalar_lea.sflag (!%p108_p3), [#allocation3], %s552_s23  ;;  %s556_s30 = scalar_lea.vmem (!%p108_p3), [#allocation2], %s269_s24 }
  0x34   : > { %416 = dma.done.wait (%p629_p6), %s114_s26, 1024  }
  0x35   : > { %418 = vsyncadd (%p629_p6), %s114_s26, 4294966272  ;;  %v139_v0 = vld [vmem:[%s556_s30 + $0x8] sm:$0xff]  ;;  %v141_v2 = vld [vmem:[%s556_s30 + $0x18] sm:$0xff]  ;;  %s270_s17 = sshll.u32 %s552_s23, 5  ;;  %s278_s28 = sshll.u32 %s476_s10, 9 }
  0x36   : > { %v146_v1 = vsub.f32 0.0, %v139_v0  ;;  %v143_v3 = vld [vmem:[%s556_s30 + $0x28] sm:$0xff]  ;;  %v147_v4 = vsub.f32 0.0, %v141_v2  ;;  %v145_v6 = vld [vmem:[%s556_s30 + $0x38] sm:$0xff]  ;;  %v138_v20 = vld [vmem:[%s556_s30] sm:$0xff]  ;;  %s135_s25 = scalar_lea.vmem [#allocation5], %s270_s17  ;;  %s577_s3 = scalar_lea.hbm %s621_s1, %s278_s28 }
  0x37   : > { %v148_v5 = vsub.f32 0.0, %v143_v3  ;;  %v149_v8 = vsub.f32 0.0, %v145_v6  ;;  %v140_v21 = vld [vmem:[%s556_s30 + $0x10] sm:$0xff]  ;;  %s188_s27 = sshll.u32 %s135_s25, 4  ;;  %v142_v23 = vld [vmem:[%s556_s30 + $0x20] sm:$0xff]  ;;  %s175_s10 = scalar_lea.sflag [#allocation4], %s552_s23  ;;  %s572_s27 = int_to_ptr.vmem [resolvable:$true] %s188_s27 }
  0x38   : > { %v150_v7 = vmul.f32 1.442695, %v146_v1  ;;  %v152_v9 = vmul.f32 1.442695, %v147_v4  ;;  %v144_v26 = vld [vmem:[%s556_s30 + $0x30] sm:$0xff]  ;;  %s373_s4 = scalar_lea.vmem %s572_s27, 512 }
  0x39   : > { %v154_v10 = vmul.f32 1.442695, %v148_v5  ;;  %v156_v11 = vmul.f32 1.442695, %v149_v8  ;;  %p374_p11 = scmp.ne.s32.totalorder %s572_s27, %s373_s4  ;;  %p630_p12 = scmp.ne.s32.totalorder %s626_s18, 0 }
  0x3a   : > { %329 = vpow2.f32 %v150_v7  ;;  %s442_s5 = smov [#allocation5]  }
  0x3b   : > { %331 = vpow2.f32 %v152_v9  ;;  %p375_p13 = pnand %p374_p11, %p630_p12  ;;  %s377_s11 = sshll.u32 %s442_s5, 4  ;;  %s378_s11 = int_to_ptr.vmem [resolvable:$false] %s377_s11 }
  0x3c   : > { %333 = vpow2.f32 %v154_v10  ;;  %s379_s13 = scalar_lea.vmem %s378_s11, 1024  ;;  %p380_p5 = scmp.lt.s32.totalorder %s572_s27, %s378_s11 }
  0x3d   : > { %335 = vpow2.f32 %v156_v11  ;;  %p376_p4 = pneg %p375_p13  ;;  %p381_p7 = scmp.lt.s32.totalorder %s379_s13, %s373_s4 }
  0x3f   : > { %p382_p8 = por %p381_p7, %p380_p5 }
  0x41   : > { %p383_p10 = pnand %p382_p8, %p376_p4 }
  0x47   : > { %v330_v12 = vpop.eup %329 }
  0x48   : > { %v332_v13 = vpop.eup %331  ;;  %v158_v14 = vadd.f32 1.0, %v330_v12 }
  0x49   : > { %v334_v15 = vpop.eup %333  ;;  %v159_v16 = vadd.f32 1.0, %v332_v13 }
  0x4a   : > { %v336_v17 = vpop.eup %335  ;;  %337 = vrcp.f32 %v158_v14  ;;  %v160_v18 = vadd.f32 1.0, %v334_v15 }
  0x4b   : > { %339 = vrcp.f32 %v159_v16  ;;  %v161_v19 = vadd.f32 1.0, %v336_v17 }
  0x4c   : > { %341 = vrcp.f32 %v160_v18 }
  0x4d   : > { %343 = vrcp.f32 %v161_v19 }
  0x57   : > { %v338_v22 = vpop.eup %337 }
  0x58   : > { %v340_v24 = vpop.eup %339  ;;  %v166_v25 = vmul.f32 %v338_v22, %v138_v20 }
  0x59   : > { %v342_v27 = vpop.eup %341  ;;  %v167_v28 = vmul.f32 %v340_v24, %v140_v21 }
  0x5a   : > { %v344_v29 = vpop.eup %343  ;;  %170 = vst [vmem:[%s135_s25] sm:$0xff] %v166_v25  ;;  %v168_v30 = vmul.f32 %v342_v27, %v142_v23 }
  0x5b   : > { %171 = vst [vmem:[%s135_s25 + $0x8] sm:$0xff] %v167_v28  ;;  %v169_v31 = vmul.f32 %v344_v29, %v144_v26 }
  0x5c   : > { %172 = vst [vmem:[%s135_s25 + $0x10] sm:$0xff] %v168_v30 }
  0x5d   : > { %173 = vst [vmem:[%s135_s25 + $0x18] sm:$0xff] %v169_v31 }
  0x5e   : > { %386 = shalt.err (!%p383_p10)
}
  0x5f   : > { %s387_s14 = scalar_lea.hbm %s577_s3, 512  ;;  %s391_s21 = scalar_lea.hbm %s621_s1, 1024 }
  0x60   : > { %p388_p0 = scmp.ne.s32.totalorder %s577_s3, %s387_s14  ;;  %p392_p1 = scmp.lt.s32.totalorder %s577_s3, %s621_s1 }
  0x61   : > { %p393_p3 = scmp.lt.s32.totalorder %s391_s21, %s387_s14 }
  0x62   : > { %p389_p2 = pnand %p388_p0, %p630_p12 }
  0x63   : > { %p394_p6 = por %p393_p3, %p392_p1 }
  0x64   : > { %p390_p9 = pneg %p389_p2 }
  0x66   : > { %p395_p11 = pnand %p394_p6, %p390_p9 }
  0x68   : > { %398 = shalt.err (!%p395_p11)
}
  0x69   : > { %s443_s26 = smov 128   ;;  %s444_s30 = smov 8  }
  0x6a   : > { %281 = dma.vmem_to_hbm [thread:$0]  (%p630_p12), %s572_s27, 512, %s577_s3, %s175_s10, %s443_s26, %s443_s26, %s444_s30  }
  0x6b PF: > { %s203_s17 = sand.u32 1, %s425_s6   ;;  %p631_p13 = scmp.ne.s32.totalorder %s627_s19, 0 }
  0x6c   : > { %p632_p4 = scmp.ge.s32.totalorder %s437_s9, 2  ;;  %s204_s25 = scalar_lea.sflag [#allocation4], %s203_s17 }
  0x6e   : > { %p288_p5 = pnand %p632_p4, %p631_p13 }
  0x70   : > { %p289_p7 = pneg %p288_p5 }
  0x72   : > { %420 = dma.done.wait (%p289_p7), %s204_s25, 512  }
  0x73   : > { %422 = vsyncadd (%p289_p7), %s204_s25, 4294966784  ;;  %p14_p8 = scmp.ge.s32.totalorder %s480_s12, 4   ;;  %s633_s6 = smov %s429_s7 }
  0x74   : > { %s634_s7 = smov %s433_s8  ;;  %s635_s8 = smov %s492_s15 }
  0x75   : > { %s636_s9 = smov %s480_s12  ;;  %16 = sbr.rel (!%p14_p8) target bundleno = 5 (0x5), region = 69 }
  0x7a   :  { %209 = vsyncpa [#allocation3], 1 }
  0x7b   :  { %211 = vsyncpa [#allocation3 + $0x1], 1 }
  0x7c   :  { %212 = vsyncpa [#allocation4], 1 }
  0x7d   :  { %214 = vsyncpa [#allocation4 + $0x1], 1 }

</bundles_post_ra>
